<compile_context>
chip_gen: v6e
topology: v6e:2x2x1
jax: 0.10.0
libtpu: 0.0.40
codegen_flags: <defaults>
</compile_context>

<pallas_src>
import jax
import jax.numpy as jnp
from jax.experimental import pallas as pl
from jax.experimental.pallas import tpu as pltpu


def _make_kernel(hw_total, thw, needs_mask):
    inv_hw = 1.0 / float(hw_total)

    def kernel(x_ref, w1_ref, w2_ref, o_ref, sum_acc, max_acc):
        # x_ref:  (BT, C, THW)  batch tile; channels on sublanes, spatial on lanes
        # w1_ref: (C, Cr)       first linear weight (pre-transposed for x @ W)
        # w2_ref: (Cr, C)       second linear weight (pre-transposed)
        # o_ref:  (1, BT, C)    per-batch-tile channel attention weights
        # sum_acc / max_acc: (BT, C) f32 running pooling accumulators.
        k = pl.program_id(1)

        @pl.when(k == 0)
        def _init():
            sum_acc[...] = jnp.zeros_like(sum_acc)
            max_acc[...] = jnp.full_like(max_acc, -jnp.inf)

        x = x_ref[...].astype(jnp.float32)              # (BT, C, THW)

        if needs_mask:
            # Tail tile may contain out-of-bounds padding: mask it out.
            pos = jax.lax.broadcasted_iota(jnp.int32, (1, 1, thw), 2) + k * thw
            valid = pos < hw_total
            x_sum = jnp.where(valid, x, 0.0)
            x_max = jnp.where(valid, x, -jnp.inf)
        else:
            x_sum = x
            x_max = x

        # Spatial (lane-axis) reductions — free under the DMA.
        sum_acc[...] = sum_acc[...] + jnp.sum(x_sum, axis=-1)        # (BT, C)
        max_acc[...] = jnp.maximum(max_acc[...], jnp.max(x_max, axis=-1))

        @pl.when(k == pl.num_programs(1) - 1)
        def _finalize():
            w1 = w1_ref[...]                             # (C, Cr)
            w2 = w2_ref[...]                             # (Cr, C)

            def shared_mlp(v):                           # v: (BT, C)
                h = jnp.dot(v, w1, preferred_element_type=jnp.float32)
                h = jnp.maximum(h, 0.0)                  # ReLU
                return jnp.dot(h, w2, preferred_element_type=jnp.float32)

            avg = sum_acc[...] * inv_hw                  # (BT, C)
            out = shared_mlp(avg) + shared_mlp(max_acc[...])
            gate = jax.nn.sigmoid(out)                   # (BT, C)
            o_ref[...] = gate[None, :, :].astype(o_ref.dtype)

    return kernel


def _pick_bt(b):
    """Largest divisor of b (<= 8) that still leaves >= 2 batch tiles
    (keeps both v7x TensorCores busy); falls back to 1."""
    best = 1
    for cand in range(1, min(b, 8) + 1):
        if b % cand == 0 and (b // cand >= 2 or b == 1):
            best = cand
    return best


_X_BLOCK_BUDGET_BYTES = 4 * 1024 * 1024  # per x buffer (~8 MiB double-buffered)


def _pick_thw(bt, c, hw, itemsize):
    """Spatial tile: full HW if it fits the budget, else a multiple of 128."""
    if bt * c * hw * itemsize <= _X_BLOCK_BUDGET_BYTES or hw <= 128:
        return hw
    thw = (_X_BLOCK_BUDGET_BYTES // (bt * c * itemsize)) // 128 * 128
    thw = max(128, thw)
    return min(thw, (hw // 128) * 128)


def channel_attention(x_nchw, w1_torch, w2_torch, *, thw=None):
    """Forward pass equivalent to ChannelAttention.forward.

    Args:
      x_nchw:   (B, C, H, W) input (NCHW, same as PyTorch).
      w1_torch: (C//ratio, C) — first nn.Linear weight (PyTorch (out,in) layout).
      w2_torch: (C, C//ratio) — second nn.Linear weight (PyTorch layout).
      thw:      optional spatial tile override (multiple of 128, or == H*W).

    Returns:
      (B, C, 1, 1) attention map, matching the PyTorch module.
    """
    b, c, h, w = x_nchw.shape
    hw = h * w
    cr = w1_torch.shape[0]

    # Free reshape: NCHW -> (B, C, HW). No host transpose -> 1x HBM traffic.
    x_flat = x_nchw.reshape(b, c, hw)

    # PyTorch Linear computes y = x @ W.T, so pre-transpose the (tiny) weights.
    w1 = jnp.transpose(w1_torch).astype(jnp.float32)   # (C, Cr)
    w2 = jnp.transpose(w2_torch).astype(jnp.float32)   # (Cr, C)

    bt = _pick_bt(b)
    if thw is None:
        thw = _pick_thw(bt, c, hw, x_flat.dtype.itemsize)
    nb = b // bt
    nk = pl.cdiv(hw, thw)
    needs_mask = (hw % thw) != 0

    kernel = _make_kernel(hw, thw, needs_mask)

    cost = pl.CostEstimate(
        flops=8 * b * c * cr,
        transcendentals=b * c,
        bytes_accessed=int(x_flat.size) * x_flat.dtype.itemsize
                       + (int(w1.size) + int(w2.size) + b * c) * 4,
    )

    out = pl.pallas_call(
        kernel,
        out_shape=jax.ShapeDtypeStruct((nb, bt, c), x_nchw.dtype),
        grid=(nb, nk),
        in_specs=[
            pl.BlockSpec((bt, c, thw), lambda i, k: (i, 0, k)),
            pl.BlockSpec((c, cr), lambda i, k: (0, 0)),
            pl.BlockSpec((cr, c), lambda i, k: (0, 0)),
        ],
        out_specs=pl.BlockSpec((1, bt, c), lambda i, k: (i, 0, 0)),
        scratch_shapes=[
            pltpu.VMEM((bt, c), jnp.float32),   # running sum
            pltpu.VMEM((bt, c), jnp.float32),   # running max
        ],
        compiler_params=pltpu.CompilerParams(
            dimension_semantics=("parallel", "arbitrary")),
        cost_estimate=cost,
    )(x_flat, w1, w2)

    return out.reshape(b, c, 1, 1)


def _reference(x_nchw, w1_torch, w2_torch):
    # Pure-JAX reference of the PyTorch forward (for sanity checking).
    b, c, h, w = x_nchw.shape
    avg = jnp.mean(x_nchw, axis=(2, 3))   # (B, C)
    mx = jnp.max(x_nchw, axis=(2, 3))     # (B, C)

    def mlp(v):
        hdn = jnp.maximum(v @ w1_torch.T, 0.0)
        return hdn @ w2_torch.T

    out = jax.nn.sigmoid(mlp(avg) + mlp(mx))
    return out.reshape(b, c, 1, 1)


if __name__ == "__main__":
    key = jax.random.PRNGKey(0)

    def run_case(b, c, h, w, ratio, thw=None):
        cr = max(1, c // ratio)
        kx, kw1, kw2 = jax.random.split(key, 3)
        x = jax.random.normal(kx, (b, c, h, w), dtype=jnp.float32)
        w1 = jax.random.normal(kw1, (cr, c), dtype=jnp.float32) * 0.1
        w2 = jax.random.normal(kw2, (c, cr), dtype=jnp.float32) * 0.1
        y = channel_attention(x, w1, w2, thw=thw)
        jax.block_until_ready(y)
        y_ref = _reference(x, w1, w2)
        assert y.shape == (b, c, 1, 1)
        assert jnp.allclose(y, y_ref, atol=1e-5, rtol=1e-5), (
            f"mismatch: b={b} c={c} h={h} w={w} thw={thw}")

    # Case 1: small default path (single spatial tile, 2 parallel batch tiles).
    run_case(2, 32, 16, 16, ratio=16)
    # Case 2: forced spatial tiling (two even 128-lane tiles, scratch accumulation).
    run_case(2, 32, 16, 16, ratio=16, thw=128)
    # Case 3: spatial not a multiple of the tile -> masked tail (HW=144, THW=128),
    #         with BT=2 batch rows per grid step.
    run_case(4, 64, 12, 12, ratio=8, thw=128)

    print("KERNEL_OK")
</pallas_src>

<mosaic_0001>
module attributes {stable_mosaic.version = 11 : i64} {
  func.func @kernel(%arg0: i32, %arg1: i32, %arg2: memref<1x32x256xf32, #tpu.memory_space<vmem>>, %arg3: memref<32x2xf32, #tpu.memory_space<vmem>>, %arg4: memref<2x32xf32, #tpu.memory_space<vmem>>, %arg5: memref<1x1x32xf32, #tpu.memory_space<vmem>>, %arg6: memref<1x32xf32, #tpu.memory_space<vmem>>, %arg7: memref<1x32xf32, #tpu.memory_space<vmem>>) attributes {dimension_semantics = [#tpu.dimension_semantics<parallel>, #tpu.dimension_semantics<arbitrary>], iteration_bounds = array<i64: 2, 1>, scalar_prefetch = 0 : i64, scratch_operands = 2 : i64, tpu.core_type = #tpu.core_type<tc>, window_params = [{transform_indices = @transform_0, window_bounds = array<i64: 1, 32, 256>}, {pipeline_mode = #tpu.pipeline_mode<synchronous>, transform_indices = @transform_1, window_bounds = array<i64: 32, 2>}, {pipeline_mode = #tpu.pipeline_mode<synchronous>, transform_indices = @transform_2, window_bounds = array<i64: 2, 32>}, {transform_indices = @transform_3, window_bounds = array<i64: 1, 1, 32>}]} {
    %c0_i32 = arith.constant 0 : i32
    %0 = arith.cmpi eq, %arg1, %c0_i32 : i32
    %1 = arith.extui %0 : i1 to i32
    %c0_i32_0 = arith.constant 0 : i32
    %2 = arith.cmpi ne, %1, %c0_i32_0 : i32
    scf.if %2 {
      %cst_14 = arith.constant 0.000000e+00 : f32
      %15 = vector.broadcast %cst_14 : f32 to vector<1x32xf32>
      %c0_15 = arith.constant 0 : index
      %c0_16 = arith.constant 0 : index
      %16 = vector.load %arg6[%c0_15, %c0_16] : memref<1x32xf32, #tpu.memory_space<vmem>>, vector<1x32xf32>
      tpu.vector_store %arg6[%c0_15, %c0_16], %15 {strides = array<i32>} : memref<1x32xf32, #tpu.memory_space<vmem>>, vector<1x32xf32>,
      %cst_17 = arith.constant 0xFF800000 : f32
      %17 = vector.broadcast %cst_17 : f32 to vector<1x32xf32>
      %c0_18 = arith.constant 0 : index
      %c0_19 = arith.constant 0 : index
      %18 = vector.load %arg7[%c0_18, %c0_19] : memref<1x32xf32, #tpu.memory_space<vmem>>, vector<1x32xf32>
      tpu.vector_store %arg7[%c0_18, %c0_19], %17 {strides = array<i32>} : memref<1x32xf32, #tpu.memory_space<vmem>>, vector<1x32xf32>,
    } else {
    }
    %c0 = arith.constant 0 : index
    %c0_1 = arith.constant 0 : index
    %c0_2 = arith.constant 0 : index
    %3 = vector.load %arg2[%c0, %c0_1, %c0_2] : memref<1x32x256xf32, #tpu.memory_space<vmem>>, vector<1x32x256xf32>
    %c0_3 = arith.constant 0 : index
    %c0_4 = arith.constant 0 : index
    %4 = vector.load %arg6[%c0_3, %c0_4] : memref<1x32xf32, #tpu.memory_space<vmem>>, vector<1x32xf32>
    %cst = arith.constant dense<0.000000e+00> : vector<1x32xf32>
    %5 = vector.multi_reduction <add>, %3, %cst [2] : vector<1x32x256xf32> to vector<1x32xf32>
    %6 = arith.addf %4, %5 : vector<1x32xf32>
    %c0_5 = arith.constant 0 : index
    %c0_6 = arith.constant 0 : index
    %7 = vector.load %arg6[%c0_5, %c0_6] : memref<1x32xf32, #tpu.memory_space<vmem>>, vector<1x32xf32>
    tpu.vector_store %arg6[%c0_5, %c0_6], %6 {strides = array<i32>} : memref<1x32xf32, #tpu.memory_space<vmem>>, vector<1x32xf32>,
    %c0_7 = arith.constant 0 : index
    %c0_8 = arith.constant 0 : index
    %8 = vector.load %arg7[%c0_7, %c0_8] : memref<1x32xf32, #tpu.memory_space<vmem>>, vector<1x32xf32>
    %cst_9 = arith.constant dense<0xFF800000> : vector<1x32xf32>
    %9 = vector.multi_reduction <maximumf>, %3, %cst_9 [2] : vector<1x32x256xf32> to vector<1x32xf32>
    %10 = arith.maximumf %8, %9 : vector<1x32xf32>
    %c0_10 = arith.constant 0 : index
    %c0_11 = arith.constant 0 : index
    %11 = vector.load %arg7[%c0_10, %c0_11] : memref<1x32xf32, #tpu.memory_space<vmem>>, vector<1x32xf32>
    tpu.vector_store %arg7[%c0_10, %c0_11], %10 {strides = array<i32>} : memref<1x32xf32, #tpu.memory_space<vmem>>, vector<1x32xf32>,
    %c0_i32_12 = arith.constant 0 : i32
    %12 = arith.cmpi eq, %arg1, %c0_i32_12 : i32
    %13 = arith.extui %12 : i1 to i32
    %c0_i32_13 = arith.constant 0 : i32
    %14 = arith.cmpi ne, %13, %c0_i32_13 : i32
    scf.if %14 {
      %c0_14 = arith.constant 0 : index
      %c0_15 = arith.constant 0 : index
      %15 = vector.load %arg3[%c0_14, %c0_15] : memref<32x2xf32, #tpu.memory_space<vmem>>, vector<32x2xf32>
      %c0_16 = arith.constant 0 : index
      %c0_17 = arith.constant 0 : index
      %16 = vector.load %arg4[%c0_16, %c0_17] : memref<2x32xf32, #tpu.memory_space<vmem>>, vector<2x32xf32>
      %c0_18 = arith.constant 0 : index
      %c0_19 = arith.constant 0 : index
      %17 = vector.load %arg6[%c0_18, %c0_19] : memref<1x32xf32, #tpu.memory_space<vmem>>, vector<1x32xf32>
      %cst_20 = arith.constant 3.906250e-03 : f32
      %18 = vector.broadcast %cst_20 : f32 to vector<1x32xf32>
      %19 = arith.mulf %17, %18 : vector<1x32xf32>
      %cst_21 = arith.constant dense<0.000000e+00> : vector<1x2xf32>
      %20 = tpu.matmul %19, %15, %cst_21 {dimension_numbers = #tpu.dot_dimension_numbers<[1], [0], [0], [1], [0, 0, 1, 1], [], []>} : vector<1x32xf32>, vector<32x2xf32>, vector<1x2xf32> -> vector<1x2xf32>
      %cst_22 = arith.constant 0.000000e+00 : f32
      %21 = vector.broadcast %cst_22 : f32 to vector<1x2xf32>
      %22 = arith.maximumf %20, %21 : vector<1x2xf32>
      %cst_23 = arith.constant dense<0.000000e+00> : vector<1x32xf32>
      %23 = tpu.matmul %22, %16, %cst_23 {dimension_numbers = #tpu.dot_dimension_numbers<[1], [0], [0], [1], [0, 0, 1, 1], [], []>} : vector<1x2xf32>, vector<2x32xf32>, vector<1x32xf32> -> vector<1x32xf32>
      %c0_24 = arith.constant 0 : index
      %c0_25 = arith.constant 0 : index
      %24 = vector.load %arg7[%c0_24, %c0_25] : memref<1x32xf32, #tpu.memory_space<vmem>>, vector<1x32xf32>
      %cst_26 = arith.constant dense<0.000000e+00> : vector<1x2xf32>
      %25 = tpu.matmul %24, %15, %cst_26 {dimension_numbers = #tpu.dot_dimension_numbers<[1], [0], [0], [1], [0, 0, 1, 1], [], []>} : vector<1x32xf32>, vector<32x2xf32>, vector<1x2xf32> -> vector<1x2xf32>
      %cst_27 = arith.constant 0.000000e+00 : f32
      %26 = vector.broadcast %cst_27 : f32 to vector<1x2xf32>
      %27 = arith.maximumf %25, %26 : vector<1x2xf32>
      %cst_28 = arith.constant dense<0.000000e+00> : vector<1x32xf32>
      %28 = tpu.matmul %27, %16, %cst_28 {dimension_numbers = #tpu.dot_dimension_numbers<[1], [0], [0], [1], [0, 0, 1, 1], [], []>} : vector<1x2xf32>, vector<2x32xf32>, vector<1x32xf32> -> vector<1x32xf32>
      %29 = arith.addf %23, %28 : vector<1x32xf32>
      %30 = arith.negf %29 : vector<1x32xf32>
      %31 = math.exp %30 : vector<1x32xf32>
      %cst_29 = arith.constant 1.000000e+00 : f32
      %32 = vector.broadcast %cst_29 : f32 to vector<1x32xf32>
      %33 = arith.addf %32, %31 : vector<1x32xf32>
      %34 = arith.divf %32, %33 : vector<1x32xf32>
      %35 = vector.shape_cast %34 : vector<1x32xf32> to vector<1x1x32xf32>
      %c0_30 = arith.constant 0 : index
      %c0_31 = arith.constant 0 : index
      %c0_32 = arith.constant 0 : index
      %36 = vector.load %arg5[%c0_30, %c0_31, %c0_32] : memref<1x1x32xf32, #tpu.memory_space<vmem>>, vector<1x1x32xf32>
      tpu.vector_store %arg5[%c0_30, %c0_31, %c0_32], %35 {strides = array<i32>} : memref<1x1x32xf32, #tpu.memory_space<vmem>>, vector<1x1x32xf32>,
    } else {
    }
    return
  }
  func.func @transform_0(%arg0: i32, %arg1: i32) -> (i32, i32, i32) {
    %c0_i32 = arith.constant 0 : i32
    %c0_i32_0 = arith.constant 0 : i32
    return %arg0, %c0_i32, %arg1 : i32, i32, i32
  }
  func.func @transform_1(%arg0: i32, %arg1: i32) -> (i32, i32) {
    %c0_i32 = arith.constant 0 : i32
    %c0_i32_0 = arith.constant 0 : i32
    %c0_i32_1 = arith.constant 0 : i32
    return %c0_i32, %c0_i32_0 : i32, i32
  }
  func.func @transform_2(%arg0: i32, %arg1: i32) -> (i32, i32) {
    %c0_i32 = arith.constant 0 : i32
    %c0_i32_0 = arith.constant 0 : i32
    %c0_i32_1 = arith.constant 0 : i32
    return %c0_i32, %c0_i32_0 : i32, i32
  }
  func.func @transform_3(%arg0: i32, %arg1: i32) -> (i32, i32, i32) {
    %c0_i32 = arith.constant 0 : i32
    %c0_i32_0 = arith.constant 0 : i32
    %c0_i32_1 = arith.constant 0 : i32
    return %arg0, %c0_i32, %c0_i32_0 : i32, i32, i32
  }
}

</mosaic_0001>

<bundles_post_ra>
// kernel: tpu_custom_call.1
= control target key start
LH: loop header
LB: loop body
LE: loop exit
PB: predicated region body
PF: predicated region fallthrough
CT: control target
= control target key end

     0   :  { %8 = vsyncpa [#allocation5], 0  ;;  %s2032_s0 = inlined_call_operand.hbm [shape: f32[2,32,256], index: 0, kind: input, shape index: {}]   ;;  %s2033_s1 = inlined_call_operand.vmem [shape: f32[32,2], index: 1, kind: input, shape index: {}]   ;;  %s2034_s2 = inlined_call_operand.vmem [shape: f32[2,32], index: 2, kind: input, shape index: {}]   ;;  %s2035_s3 = inlined_call_operand.hbm [shape: f32[2,1,32], index: 3, kind: output, shape index: {}]  }
   0x1   :  { %10 = vsyncpa [#allocation5 + $0x1], 0 }
   0x2   :  { %11 = vsyncpa [#allocation6], 0 }
   0x3   :  { %13 = vsyncpa [#allocation6 + $0x1], 0  ;;  %s1695_s12 = smov 0   ;;  %s1697_s13 = smov 0  }
   0x4   :  { %s1699_s14 = smov 0   ;;  %s1701_s15 = smov 0  }
   0x5   :  { %s1703_s16 = smov 0   ;;  %s1705_s17 = smov 0  }
   0x6 LB: > { %s1415_s18 = sadd.s32 4294967295, %s1664_s17   ;;  %s1416_s19 = sadd.s32 4294967294, %s1664_s17   ;;  %s1664_s17 = sphi %s1705_s17, %s19_s17   ;;  %s1660_s16 = sphi %s1703_s16, %s2046_s16   ;;  %s1656_s15 = sphi %s1701_s15, %s2045_s15   ;;  %s1652_s14 = sphi %s1699_s14, %s2044_s14   ;;  %s1648_s13 = sphi %s1697_s13, %s2043_s13   ;;  %s1644_s12 = sphi %s1695_s12, %s2042_s12  }
   0x7   : > { %s31_s20 = sadd.s32 1, %s1660_s16  ;;  %s40_s21 = sadd.s32 1, %s1652_s14 }
   0x8   : > { %p33_p0 = scmp.ge.s32.totalorder %s31_s20, 2  ;;  %p47_p1 = scmp.ne.s32.totalorder %s1652_s14, %s1648_s13 }
   0x9   : > { %p48_p2 = scmp.eq.s32.totalorder %s1664_s17, 0  ;;  %p53_p3 = scmp.ne.s32.totalorder %s1648_s13, %s1644_s12 }
   0xa   : > { %s2048_s20 = smov (%p33_p0, %s31_s20), 0  ;;  %p54_p5 = scmp.eq.s32.totalorder %s1415_s18, 0 }
   0xb   : > { %p1736_p4 = por %p48_p2, %p47_p1  ;;  %s35_s23 = ssub.s32 %s1660_s16, %s2048_s20 }
   0xc   : > { %p119_p6 = scmp.eq.s32.totalorder %s1415_s18, 1  ;;  %p38_p7 = scmp.eq.s32.totalorder %s35_s23, 0 }
   0xd   : > { %p1742_p8 = por %p54_p5, %p53_p3  ;;  %p125_p10 = scmp.eq.s32.totalorder %s1416_s19, 1 }
   0xe   : > { %p1746_p9 = por %p119_p6, %p47_p1  ;;  %p1493_p13 = scmp.lt.s32.totalorder %s1664_s17, 2 }
   0xf   : > { %s1751_s26 = scalar_select %p38_p7, %s1652_s14, %s40_s21  }
  0x10   : > { %p1753_p11 = por %p125_p10, %p53_p3  ;;  %s151_s28 = sand.u32 1, %s1652_s14  }
  0x11   : > { %s1419_s29 = sshll.u32 %s151_s28, 6  ;;  %s1434_s30 = sshll.u32 %s1660_s16, 10 }
  0x12   : > { %s163_s6 = scalar_lea.hbm %s2032_s0, %s1434_s30  ;;  %s155_s7 = scalar_lea.vmem [#allocation4], %s1419_s29 }
  0x13   : > { %s164_s8 = sshll.u32 %s155_s7, 4  ;;  %p1766_p0 = pnand %p1493_p13, %p1736_p4  ;;  %s165_s8 = int_to_ptr.vmem [resolvable:$true] %s164_s8 }
  0x14   : > { %p1422_p1 = scmp.ge.s32.totalorder %s1664_s17, 1  ;;  %s152_s10 = scalar_lea.sflag [#allocation5], %s151_s28 }
  0x15   : > { %p1558_p2 = pneg %p1766_p0  ;;  %s1569_s11 = scalar_lea.vmem %s165_s8, 1024 }
  0x16   : > { %p1570_p3 = scmp.ne.s32.totalorder %s165_s8, %s1569_s11  ;;  %s1666_s18 = smov [#allocation4]  }
  0x17   : > { %s1574_s19 = sshll.u32 %s1666_s18, 4  ;;  %s1575_s19 = int_to_ptr.vmem [resolvable:$false] %s1574_s19 }
  0x18   : > { %p1572_p5 = pnand %p1570_p3, %p1558_p2  ;;  %s1576_s21 = scalar_lea.vmem %s1575_s19, 2048 }
  0x19   : > { %p1577_p7 = scmp.lt.s32.totalorder %s165_s8, %s1575_s19  ;;  %p1578_p10 = scmp.lt.s32.totalorder %s1576_s21, %s1569_s11 }
  0x1a   : > { %p1573_p6 = pneg %p1572_p5 }
  0x1b   : > { %p1579_p12 = por %p1578_p10, %p1577_p7 }
  0x1d   : > { %p1580_p4 = pnand %p1579_p12, %p1573_p6 }
  0x1f   : > { %1583 = shalt.err (!%p1580_p4)
}
  0x20   : > { %s1667_s22 = smov 256   ;;  %s1668_s23 = smov 16  }
  0x21   : > { %1488 = dma.hbm_to_vmem [thread:$0]  (!%p1766_p0), %s163_s6, 1024, %s165_s8, %s152_s10, %s1667_s22, %s1667_s22, %s1668_s23  }
  0x22   : > { %p172_p13 = scmp.lt.s32.totalorder %s1664_s17, 3 }
  0x24   : > { %p173_p2 = pnand %p1422_p1, %p172_p13 }
  0x25   : > { %s1779_s28 = sand.u32 (!%p173_p2), 1, %s1648_s13  }
  0x26   : > { %176 = sbr.rel (%p173_p2) target bundleno = 810 (0x32a), region = 32  ;;  %s1423_s29 = sshll.u32 (!%p173_p2), %s1779_s28, 6 }
  0x27   : > { %s179_s30 = scalar_lea.sflag (!%p173_p2), [#allocation5], %s1779_s28  ;;  %s182_s4 = scalar_lea.vmem (!%p173_p2), [#allocation4], %s1423_s29 }
  0x2b   : > { %1635 = dma.done.wait (%p1742_p8), %s179_s30, 1024  }
  0x2c   : > { %1637 = vsyncadd (%p1742_p8), %s179_s30, 4294966272  ;;  %v212_v0 = vld [vmem:[%s182_s4] sm:$0xff]  ;;  %v213_v1 = vld [vmem:[%s182_s4 + $0x8] sm:$0xff]  ;;  %v1669_v16 = vmov 0   ;;  %v237_v17 = vlaneseq  ;;  %v1670_v18 = vmov 1966171168  }
  0x2d   : > { %v214_v2 = vld [vmem:[%s182_s4 + $0x10] sm:$0xff]  ;;  %v221_v3 = vadd.f32 %v213_v1, %v212_v0  ;;  %v215_v4 = vld [vmem:[%s182_s4 + $0x18] sm:$0xff]  ;;  %v216_v5 = vld [vmem:[%s182_s4 + $0x20] sm:$0xff]  ;;  %v619_v12 = vmax.f32 %v212_v0, %v213_v1  ;;  %1550 = vset.pattern.permute.xlu0 %v1669_v16  ;;  %1551 = vset.pattern.permute.xlu1 %v1669_v16  ;;  %v370_v19 = vunpack.c.l.s4 %v1670_v18  ;;  %vm209_vm0 = vcmask 253952   ;;  %s1431_s21 = sshll.u32 %s1656_s15, 4  ;;  %s203_s22 = scalar_lea.vmem [#allocation7], %s1779_s28 }
  0x2e   : > { %v217_v6 = vld [vmem:[%s182_s4 + $0x28] sm:$0xff]  ;;  %v218_v8 = vld [vmem:[%s182_s4 + $0x30] sm:$0xff]  ;;  %v219_v9 = vld [vmem:[%s182_s4 + $0x38] sm:$0xff]  ;;  %v224_v10 = vadd.f32 %v215_v4, %v214_v2  ;;  %v622_v13 = vmax.f32 %v214_v2, %v215_v4  ;;  %v1788_v20 = vshrl.u32 %v237_v17, 7  ;;  %vm1673_vm1 = vmmov 0   ;;  %s1338_s23 = sshll.u32 %s203_s22, 4  ;;  %s1989_s4 = scalar_lea.hbm %s2035_s3, %s1431_s21  ;;  %s1339_s23 = int_to_ptr.vmem [resolvable:$true] %s1338_s23 }
  0x2f   : > { %v227_v7 = vadd.f32 %v217_v6, %v216_v5  ;;  %222 = vadd.xlane.f32.xlu0 %v221_v3  ;;  %v230_v11 = vadd.f32 %v219_v9, %v218_v8  ;;  %v625_v14 = vmax.f32 %v216_v5, %v217_v6  ;;  %v628_v15 = vmax.f32 %v218_v8, %v219_v9  ;;  %s1326_s24 = scalar_lea.sflag [#allocation6], %s1779_s28  ;;  %s1584_s5 = scalar_lea.vmem %s1339_s23, 16 }
  0x30   : > { %v371_v21 = vunpack.c.0.s8 %v370_v19  ;;  %v1791_v22 = vsub.s32 0, %v1788_v20  ;;  %v1794_v23 = vsub.s32 1, %v1788_v20  ;;  %v1797_v24 = vsub.s32 2, %v1788_v20  ;;  %p1585_p8 = scmp.ne.s32.totalorder %s1339_s23, %s1584_s5  ;;  %s1674_s6 = smov [#allocation7]  }
  0x31   : > { %228 = vadd.xlane.f32.xlu1 %v227_v7  ;;  %v1800_v25 = vsub.s32 3, %v1788_v20  ;;  %v1803_v26 = vsub.s32 4, %v1788_v20  ;;  %v1806_v27 = vsub.s32 5, %v1788_v20  ;;  %v1809_v28 = vsub.s32 6, %v1788_v20  ;;  %s1588_s7 = sshll.u32 %s1674_s6, 4  ;;  %s1589_s7 = int_to_ptr.vmem [resolvable:$false] %s1588_s7 }
  0x32   : > { %v1812_v29 = vsub.s32 7, %v1788_v20  ;;  %v1815_v31 = vsub.s32 %v371_v21, %v1788_v20  ;;  %vm584_vm2 = vcmask 130112   ;;  %vm591_vm3 = vcmask 195712   ;;  %p1586_p12 = pnand %p1585_p8, %p1746_p9  ;;  %s1590_s15 = scalar_lea.vmem %s1589_s7, 32 }
  0x33   : > { %225 = vadd.xlane.f32.xlu0 %v224_v10  ;;  %vm598_vm4 = vcmask 261312   ;;  %vm1017_vm5 = vcmask 261120   ;;  %vm1171_vm6 = vcmask 1041408   ;;  %vm1167_vm7 = vcmask 15360   ;;  %p1591_p1 = scmp.lt.s32.totalorder %s1339_s23, %s1589_s7  ;;  %p1592_p3 = scmp.lt.s32.totalorder %s1590_s15, %s1584_s5 }
  0x34   : > { %p1587_p0 = pneg %p1586_p12 }
  0x35   : > { %231 = vadd.xlane.f32.xlu1 %v230_v11  ;;  %p1593_p5 = por %p1592_p3, %p1591_p1 }
  0x37   : > { %620 = vmax.xlane.f32.xlu0 %v619_v12  ;;  %p1594_p6 = pnand %p1593_p5, %p1587_p0 }
  0x39   : > { %623 = vmax.xlane.f32.xlu1 %v622_v13 }
  0x3b   : > { %626 = vmax.xlane.f32.xlu0 %v625_v14 }
  0x3d   : > { %629 = vmax.xlane.f32.xlu1 %v628_v15 }
  0xb8   : > { %v223_v30 = vpop.xlane.xlu0 %222 }
  0xb9   : > { %v240_v33 = vrot.slane %v223_v30, %v1791_v22  ;;  %v244_v34 = vrot.slane %v223_v30, %v1794_v23  ;;  %v248_v35 = vrot.slane %v223_v30, %v1797_v24  ;;  %v252_v36 = vrot.slane %v223_v30, %v1800_v25 }
  0xba   : > { %v229_v32 = vpop.xlane.xlu1 %228  ;;  %v256_v37 = vrot.slane %v223_v30, %v1803_v26  ;;  %v260_v38 = vrot.slane %v223_v30, %v1806_v27  ;;  %v264_v39 = vrot.slane %v223_v30, %v1809_v28  ;;  %v268_v40 = vrot.slane %v223_v30, %v1812_v29 }
  0xbb   : > { %v365_v41 = vcombine.low %v240_v33, %v244_v34  ;;  %v366_v42 = vcombine.low %v248_v35, %v252_v36  ;;  %v304_v43 = vrot.slane %v229_v32, %v1791_v22  ;;  %v308_v44 = vrot.slane %v229_v32, %v1794_v23 }
  0xbc   : > { %v226_v45 = vpop.xlane.xlu0 %225  ;;  %v367_v46 = vcombine.low %v256_v37, %v260_v38  ;;  %v368_v47 = vcombine.low %v264_v39, %v268_v40  ;;  %v312_v48 = vrot.slane %v229_v32, %v1797_v24  ;;  %v316_v49 = vrot.slane %v229_v32, %v1800_v25 }
  0xbd   : > { %v375_v50 = vrot.slane %v365_v41, %v1815_v31  ;;  %v382_v51 = vrot.slane %v366_v42, %v1815_v31  ;;  %v272_v52 = vrot.slane %v226_v45, %v1791_v22  ;;  %v276_v53 = vrot.slane %v226_v45, %v1794_v23 }
  0xbe   : > { %v389_v54 = vrot.slane %v367_v46, %v1815_v31  ;;  %v396_v55 = vrot.slane %v368_v47, %v1815_v31  ;;  %v280_v56 = vrot.slane %v226_v45, %v1797_v24  ;;  %v284_v57 = vrot.slane %v226_v45, %v1800_v25  ;;  %v232_v6 = vpop.xlane.xlu1 %231 }
  0xbf   : > { %v397_v58 = vcombine.low %v375_v50, %v382_v51  ;;  %v288_v59 = vrot.slane %v226_v45, %v1803_v26  ;;  %v292_v60 = vrot.slane %v226_v45, %v1806_v27  ;;  %v296_v61 = vrot.slane %v226_v45, %v1809_v28 }
  0xc0   : > { %v398_v62 = vcombine.low %v389_v54, %v396_v55  ;;  %v300_v63 = vrot.slane %v226_v45, %v1812_v29  ;;  %v414_v0 = vcombine.low %v272_v52, %v276_v53  ;;  %v415_v1 = vcombine.low %v280_v56, %v284_v57  ;;  %v621_v42 = vpop.xlane.xlu0 %620 }
  0xc1   : > { %v405_v2 = vrot.slane %v397_v58, %v1815_v31  ;;  %v416_v3 = vcombine.low %v288_v59, %v292_v60  ;;  %v320_v4 = vrot.slane %v229_v32, %v1803_v26  ;;  %v324_v5 = vrot.slane %v229_v32, %v1806_v27 }
  0xc2   : > { %v412_v7 = vrot.slane %v398_v62, %v1815_v31  ;;  %v417_v8 = vcombine.low %v296_v61, %v300_v63  ;;  %v424_v9 = vrot.slane %v414_v0, %v1815_v31  ;;  %v431_v10 = vrot.slane %v415_v1, %v1815_v31  ;;  %v624_v59 = vpop.xlane.xlu1 %623 }
  0xc3   : > { %v438_v11 = vrot.slane %v416_v3, %v1815_v31  ;;  %v328_v12 = vrot.slane %v229_v32, %v1809_v28  ;;  %v332_v13 = vrot.slane %v229_v32, %v1812_v29  ;;  %v463_v14 = vcombine.low %v304_v43, %v308_v44 }
  0xc4   : > { %v413_v15 = vcombine.low %v405_v2, %v412_v7  ;;  %v445_v16 = vrot.slane %v417_v8, %v1815_v31  ;;  %v446_v18 = vcombine.low %v424_v9, %v431_v10  ;;  %v464_v19 = vcombine.low %v312_v48, %v316_v49 }
  0xc5   : > { %v465_v21 = vcombine.low %v320_v4, %v324_v5  ;;  %v466_v30 = vcombine.low %v328_v12, %v332_v13  ;;  %v473_v33 = vrot.slane %v463_v14, %v1815_v31  ;;  %v336_v34 = vrot.slane %v232_v6, %v1791_v22 }
  0xc6   : > { %562 = vperm.xlu0 %1550, %v413_v15   ;;  %v447_v35 = vcombine.low %v438_v11, %v445_v16  ;;  %v454_v36 = vrot.slane %v446_v18, %v1815_v31  ;;  %v480_v37 = vrot.slane %v464_v19, %v1815_v31  ;;  %v340_v32 = vrot.slane %v232_v6, %v1794_v23 }
  0xc7   : > { %v487_v38 = vrot.slane %v465_v21, %v1815_v31  ;;  %v494_v39 = vrot.slane %v466_v30, %v1815_v31  ;;  %v344_v40 = vrot.slane %v232_v6, %v1797_v24  ;;  %v348_v41 = vrot.slane %v232_v6, %v1800_v25  ;;  %v627_v30 = vpop.xlane.xlu0 %626 }
  0xc8   : > { %v461_v43 = vrot.slane %v447_v35, %v1815_v31  ;;  %v495_v44 = vcombine.low %v473_v33, %v480_v37  ;;  %v352_v45 = vrot.slane %v232_v6, %v1803_v26  ;;  %v356_v46 = vrot.slane %v232_v6, %v1806_v27 }
  0xc9   : > { %v496_v47 = vcombine.low %v487_v38, %v494_v39  ;;  %v360_v48 = vrot.slane %v232_v6, %v1809_v28  ;;  %v364_v49 = vrot.slane %v232_v6, %v1812_v29  ;;  %v512_v50 = vcombine.low %v336_v34, %v340_v32 }
  0xca   : > { %v462_v51 = vcombine.low %v454_v36, %v461_v43  ;;  %v503_v52 = vrot.slane %v495_v44, %v1815_v31  ;;  %v513_v53 = vcombine.low %v344_v40, %v348_v41  ;;  %v514_v54 = vcombine.low %v352_v45, %v356_v46 }
  0xcb   : > { %v510_v55 = vrot.slane %v496_v47, %v1815_v31  ;;  %v515_v56 = vcombine.low %v360_v48, %v364_v49  ;;  %v522_v57 = vrot.slane %v512_v50, %v1815_v31  ;;  %v638_v58 = vrot.slane %v621_v42, %v1791_v22 }
  0xcc   : > { %565 = vperm.xlu1 %1551, %v462_v51   ;;  %v529_v60 = vrot.slane %v513_v53, %v1815_v31  ;;  %v536_v61 = vrot.slane %v514_v54, %v1815_v31  ;;  %v642_v62 = vrot.slane %v621_v42, %v1794_v23  ;;  %v646_v63 = vrot.slane %v621_v42, %v1797_v24 }
  0xcd   : > { %v511_v0 = vcombine.low %v503_v52, %v510_v55  ;;  %v543_v1 = vrot.slane %v515_v56, %v1815_v31  ;;  %v650_v2 = vrot.slane %v621_v42, %v1800_v25  ;;  %v654_v3 = vrot.slane %v621_v42, %v1803_v26  ;;  %v630_v52 = vpop.xlane.xlu1 %629 }
  0xce   : > { %v544_v4 = vcombine.low %v522_v57, %v529_v60  ;;  %v658_v5 = vrot.slane %v621_v42, %v1806_v27  ;;  %v662_v6 = vrot.slane %v621_v42, %v1809_v28  ;;  %v666_v7 = vrot.slane %v621_v42, %v1812_v29 }
  0xcf   : > { %v545_v8 = vcombine.low %v536_v61, %v543_v1  ;;  %v763_v9 = vcombine.low %v638_v58, %v642_v62  ;;  %v764_v10 = vcombine.low %v646_v63, %v650_v2  ;;  %v670_v11 = vrot.slane %v624_v59, %v1791_v22 }
  0xd0   : > { %568 = vperm.xlu1 %1551, %v511_v0   ;;  %v552_v12 = vrot.slane %v544_v4, %v1815_v31  ;;  %v765_v13 = vcombine.low %v654_v3, %v658_v5  ;;  %v766_v14 = vcombine.low %v662_v6, %v666_v7  ;;  %v674_v15 = vrot.slane %v624_v59, %v1794_v23 }
  0xd1   : > { %v559_v16 = vrot.slane %v545_v8, %v1815_v31  ;;  %v773_v18 = vrot.slane %v763_v9, %v1815_v31  ;;  %v780_v19 = vrot.slane %v764_v10, %v1815_v31  ;;  %v678_v21 = vrot.slane %v624_v59, %v1797_v24 }
  0xd2   : > { %v787_v33 = vrot.slane %v765_v13, %v1815_v31  ;;  %v794_v34 = vrot.slane %v766_v14, %v1815_v31  ;;  %v682_v35 = vrot.slane %v624_v59, %v1800_v25  ;;  %v686_v36 = vrot.slane %v624_v59, %v1803_v26 }
  0xd3   : > { %v560_v37 = vcombine.low %v552_v12, %v559_v16  ;;  %v795_v32 = vcombine.low %v773_v18, %v780_v19  ;;  %v690_v38 = vrot.slane %v624_v59, %v1806_v27  ;;  %v694_v39 = vrot.slane %v624_v59, %v1809_v28 }
  0xd4   : > { %v796_v40 = vcombine.low %v787_v33, %v794_v34  ;;  %v698_v41 = vrot.slane %v624_v59, %v1812_v29  ;;  %v812_v42 = vcombine.low %v670_v11, %v674_v15  ;;  %v813_v43 = vcombine.low %v678_v21, %v682_v35 }
  0xd5   : > { %571 = vperm.xlu1 %1551, %v560_v37   ;;  %v803_v44 = vrot.slane %v795_v32, %v1815_v31  ;;  %v814_v45 = vcombine.low %v686_v36, %v690_v38  ;;  %v702_v46 = vrot.slane %v627_v30, %v1791_v22  ;;  %v706_v47 = vrot.slane %v627_v30, %v1794_v23 }
  0xd6   : > { %v810_v48 = vrot.slane %v796_v40, %v1815_v31  ;;  %v815_v49 = vcombine.low %v694_v39, %v698_v41  ;;  %v822_v50 = vrot.slane %v812_v42, %v1815_v31  ;;  %v829_v51 = vrot.slane %v813_v43, %v1815_v31  ;;  %v1012_v39 = vld [vmem:[%s2033_s1 + $0x10] sm:$0xff]  ;;  %v1011_v43 = vld [vmem:[%s2033_s1 + $0x8] sm:$0xff] }
  0xd7   : > { %v836_v53 = vrot.slane %v814_v45, %v1815_v31  ;;  %v710_v54 = vrot.slane %v627_v30, %v1797_v24  ;;  %v714_v55 = vrot.slane %v627_v30, %v1800_v25  ;;  %v718_v56 = vrot.slane %v627_v30, %v1803_v26  ;;  %v1010_v45 = vld [vmem:[%s2033_s1] sm:$0xff] }
  0xd8   : > { %v811_v57 = vcombine.low %v803_v44, %v810_v48  ;;  %v843_v58 = vrot.slane %v815_v49, %v1815_v31  ;;  %v844_v59 = vcombine.low %v822_v50, %v829_v51  ;;  %v722_v60 = vrot.slane %v627_v30, %v1806_v27 }
  0xd9   : > { %v726_v61 = vrot.slane %v627_v30, %v1809_v28  ;;  %v730_v62 = vrot.slane %v627_v30, %v1812_v29  ;;  %v861_v63 = vcombine.low %v702_v46, %v706_v47  ;;  %v862_v0 = vcombine.low %v710_v54, %v714_v55 }
  0xda   : > { %960 = vperm.xlu1 %1551, %v811_v57   ;;  %v845_v1 = vcombine.low %v836_v53, %v843_v58  ;;  %v852_v2 = vrot.slane %v844_v59, %v1815_v31  ;;  %v863_v3 = vcombine.low %v718_v56, %v722_v60  ;;  %v734_v4 = vrot.slane %v630_v52, %v1791_v22 }
  0xdb   : > { %v864_v5 = vcombine.low %v726_v61, %v730_v62  ;;  %v871_v6 = vrot.slane %v861_v63, %v1815_v31  ;;  %v878_v7 = vrot.slane %v862_v0, %v1815_v31  ;;  %v738_v8 = vrot.slane %v630_v52, %v1794_v23 }
  0xdc   : > { %v859_v9 = vrot.slane %v845_v1, %v1815_v31  ;;  %v885_v10 = vrot.slane %v863_v3, %v1815_v31  ;;  %v742_v11 = vrot.slane %v630_v52, %v1797_v24  ;;  %v746_v12 = vrot.slane %v630_v52, %v1800_v25 }
  0xdd   : > { %v892_v13 = vrot.slane %v864_v5, %v1815_v31  ;;  %v893_v14 = vcombine.low %v871_v6, %v878_v7  ;;  %v750_v22 = vrot.slane %v630_v52, %v1803_v26  ;;  %v754_v15 = vrot.slane %v630_v52, %v1806_v27 }
  0xde   : > { %v860_v16 = vcombine.low %v852_v2, %v859_v9  ;;  %v758_v18 = vrot.slane %v630_v52, %v1809_v28  ;;  %v762_v23 = vrot.slane %v630_v52, %v1812_v29  ;;  %v910_v19 = vcombine.low %v734_v4, %v738_v8  ;;  %v1013_v29 = vld [vmem:[%s2033_s1 + $0x18] sm:$0xff] }
  0xdf   : > { %v894_v21 = vcombine.low %v885_v10, %v892_v13  ;;  %v901_v30 = vrot.slane %v893_v14, %v1815_v31  ;;  %v911_v33 = vcombine.low %v742_v11, %v746_v12  ;;  %v912_v24 = vcombine.low %v750_v22, %v754_v15 }
  0xe0   : > { %963 = vperm.xlu1 %1551, %v860_v16   ;;  %v913_v25 = vcombine.low %v758_v18, %v762_v23  ;;  %v920_v34 = vrot.slane %v910_v19, %v1815_v31  ;;  %v1671_v38 = vmov 0.0   ;;  %v1672_v41 = vmov -inf  }
  0xe1   : > { %v908_v35 = vrot.slane %v894_v21, %v1815_v31  ;;  %v927_v26 = vrot.slane %v911_v33, %v1815_v31  ;;  %v934_v27 = vrot.slane %v912_v24, %v1815_v31  ;;  %210 = vst.msk [vmem:[#allocation2] sm:$0x1] %vm209_vm0, %v1671_v38  ;;  %1449 = vmatprep.subr.mxu0 %v1671_v38  ;;  %211 = vst.msk [vmem:[#allocation3] sm:$0x1] %vm209_vm0, %v1672_v41  ;;  %v1014_v21 = vld [vmem:[%s2034_s2] sm:$0x3] }
  0xe2   : > { %v941_v28 = vrot.slane %v913_v25, %v1815_v31  ;;  %1460 = vmatprep.subr.mxu1 %v1671_v38  ;;  %1450 = vmatpush3.msra.mxu0 %v1013_v29  ;;  %v574_v46 = vand.u32 127, %v237_v17 }
  0xe3   : > { %v909_v36 = vcombine.low %v901_v30, %v908_v35  ;;  %v942_v37 = vcombine.low %v920_v34, %v927_v26  ;;  %1451 = vmatprep.subr.mxu0 %v1671_v38  ;;  %1461 = vmatpush3.msra.mxu1 %v1013_v29 }
  0xe4   : > { %v943_v32 = vcombine.low %v934_v27, %v941_v28  ;;  %1452 = vmatpush3.msra.mxu0 %v1012_v39  ;;  %1462 = vmatprep.subr.mxu1 %v1671_v38  ;;  %v579_v47 = vadd.s32 4294967288, %v574_v46  ;;  %v586_v48 = vadd.s32 4294967280, %v574_v46  ;;  %v593_v51 = vadd.s32 4294967272, %v574_v46 }
  0xe5   : > { %966 = vperm.xlu1 %1551, %v909_v36   ;;  %v950_v40 = vrot.slane %v942_v37, %v1815_v31  ;;  %1453 = vmatprep.subr.mxu0 %v1671_v38  ;;  %v577_v53 = vsub.s32 %v574_v46, %v1788_v20 }
  0xe6   : > { %v957_v42 = vrot.slane %v943_v32, %v1815_v31  ;;  %1457 = vmatprep.mubr.msk.f32.mxu0 %vm1673_vm1, %v1671_v38  ;;  %1454 = vmatpush3.msra.mxu0 %v1011_v43  ;;  %v582_v50 = vsub.s32 %v579_v47, %v1788_v20  ;;  %v589_v52 = vsub.s32 %v586_v48, %v1788_v20 }
  0xe7   : > { %1463 = vmatpush3.msra.mxu1 %v1012_v39  ;;  %1455 = vmatprep.subr.mxu0 %v1671_v38  ;;  %v596_v57 = vsub.s32 %v593_v51, %v1788_v20 }
  0xe8   : > { %v958_v44 = vcombine.low %v950_v40, %v957_v42  ;;  %1456 = vmatpush3.msra.mxu0 %v1010_v45  ;;  %1464 = vmatprep.subr.mxu1 %v1671_v38  ;;  %v220_v1 = vld [vmem:[#allocation2] sm:$0x1]  ;;  %v618_v16 = vld [vmem:[#allocation3] sm:$0x1] }
  0xe9   : > { %1465 = vmatpush3.msra.mxu1 %v1011_v43  ;;  %1468 = vmatprep.mubr.msk.f32.mxu1 %vm1673_vm1, %v1671_v38 }
  0xea   : > { %969 = vperm.xlu1 %1551, %v958_v44   ;;  %1466 = vmatprep.subr.mxu1 %v1671_v38 }
  0xeb   : > { %1471 = vmatprep.subr.mxu0 %v1671_v38  ;;  %1467 = vmatpush3.msra.mxu1 %v1010_v45 }
  0xec   : > { %1476 = vmatprep.subr.mxu1 %v1671_v38 }
 0x141   : > { %v563_v55 = vpop.permute.xlu0 %562 }
 0x142   : > { %v578_v59 = vrot.slane %v563_v55, %v577_v53 }
 0x147   : > { %v566_v49 = vpop.permute.xlu1 %565 }
 0x148   : > { %v583_v56 = vrot.slane %v566_v49, %v582_v50 }
 0x14a   : > { %v585_v60 = vsel %vm584_vm2, %v583_v56, %v578_v59 }
 0x14b   : > { %v569_v54 = vpop.permute.xlu1 %568 }
 0x14c   : > { %v590_v58 = vrot.slane %v569_v54, %v589_v52 }
 0x14e   : > { %v592_v62 = vsel %vm591_vm3, %v590_v58, %v585_v60 }
 0x150   : > { %v572_v17 = vpop.permute.xlu1 %571 }
 0x151   : > { %v597_v61 = vrot.slane %v572_v17, %v596_v57 }
 0x153   : > { %v599_v63 = vsel %vm598_vm4, %v597_v61, %v592_v62 }
 0x154   : > { %v606_v0 = vrot.slane %v599_v63, %v1815_v31 }
 0x155   : > { %v961_v2 = vpop.permute.xlu1 %960 }
 0x156   : > { %v613_v3 = vrot.slane %v606_v0, %v1815_v31  ;;  %v974_v10 = vrot.slane %v961_v2, %v577_v53 }
 0x158   : > { %v615_v20 = vadd.f32 %v613_v3, %v220_v1 }
 0x15a   : > { %617 = vst.msk [vmem:[#allocation2] sm:$0x1] %vm209_vm0, %v615_v20 }
 0x15b   : > { %v964_v4 = vpop.permute.xlu1 %963 }
 0x15c   : > { %v978_v7 = vrot.slane %v964_v4, %v582_v50 }
 0x15e   : > { %v979_v12 = vsel %vm584_vm2, %v978_v7, %v974_v10 }
 0x160   : > { %v967_v5 = vpop.permute.xlu1 %966 }
 0x161   : > { %v1015_v6 = vld [vmem:[#allocation2] sm:$0x1]  ;;  %v983_v9 = vrot.slane %v967_v5, %v589_v52 }
 0x162   : > { %v1016_v8 = vmul.f32 0.00390625, %v1015_v6 }
 0x163   : > { %v984_v14 = vsel %vm591_vm3, %v983_v9, %v979_v12 }
 0x164   : > { %1458 = vmatmul.mubr.msk.f32.vlgmr.msra.gmra.mxu0 %vm1017_vm5, %v1016_v8 }
 0x165   : > { %v970_v11 = vpop.permute.xlu1 %969  ;;  %1473 = vmatprep.mubr.msk.f32.mxu0 %vm1673_vm1, %v1671_v38  ;;  %1472 = vmatpush3.msk.msra.mxu0 %vm1171_vm6, %v1014_v21 }
 0x166   : > { %v988_v13 = vrot.slane %v970_v11, %v596_v57 }
 0x168   : > { %v989_v22 = vsel %vm598_vm4, %v988_v13, %v984_v14 }
 0x169   : > { %v996_v15 = vrot.slane %v989_v22, %v1815_v31 }
 0x16b   : > { %v1003_v18 = vrot.slane %v996_v15, %v1815_v31 }
 0x16d   : > { %v1005_v23 = vmax.f32 %v618_v16, %v1003_v18 }
 0x16f   : > { %1006 = vst.msk [vmem:[#allocation3] sm:$0x1] %vm209_vm0, %v1005_v23 }
 0x176   : > { %v1092_v19 = vld [vmem:[#allocation3] sm:$0x1] }
 0x177   : > { %1469 = vmatmul.mubr.msk.f32.vlgmr.msra.gmra.mxu1 %vm1017_vm5, %v1092_v19 }
 0x178   : > { %1478 = vmatprep.mubr.msk.f32.mxu1 %vm1673_vm1, %v1671_v38  ;;  %1477 = vmatpush3.msk.msra.mxu1 %vm1171_vm6, %v1014_v21 }
 0x224   : > { %v1087_v30 = vpop.f32.mrf.mxu0 }
 0x225   : > { %v1091_v33 = vmax.f32 %v1087_v30, 0.0 }
 0x226   : > { %v1459_v31 = vpop.f32.mrf.mxu0 }
 0x227   : > { %1479 = vmatmul.mubr.msk.f32.vlgmr.msra.gmra.mxu1 %vm1167_vm7, %v1091_v33 }
 0x237   : > { %v1162_v24 = vpop.f32.mrf.mxu1 }
 0x238   : > { %v1166_v25 = vmax.f32 %v1162_v24, 0.0 }
 0x239   : > { %v1470_v34 = vpop.f32.mrf.mxu1 }
 0x23a   : > { %1474 = vmatmul.mubr.msk.f32.vlgmr.msra.gmra.mxu0 %vm1167_vm7, %v1166_v25 }
 0x2e7   : > { %v1314_v35 = vpop.f32.mrf.mxu1 }
 0x2e9   : > { %v1480_v26 = vpop.f32.mrf.mxu1 }
 0x2fa   : > { %v1241_v27 = vpop.f32.mrf.mxu0 }
 0x2fb   : > { %v1315_v28 = vadd.f32 %v1314_v35, %v1241_v27 }
 0x2fc   : > { %v1475_v29 = vpop.f32.mrf.mxu0 }
 0x2fd   : > { %v1430_v36 = vmul.f32 -1.442695, %v1315_v28 }
 0x2ff   : > { %1552 = vpow2.f32 %v1430_v36 }
 0x30c   : > { %v1553_v37 = vpop.eup %1552 }
 0x30d   : > { %v1321_v32 = vadd.f32 1.0, %v1553_v37 }
 0x30f   : > { %1554 = vrcp.f32 %v1321_v32 }
 0x31c   : > { %v1555_v38 = vpop.eup %1554 }
 0x31d   : > { %1324 = vst.msk [vmem:[%s203_s22] sm:$0x1] %vm209_vm0, %v1555_v38 }
 0x31e   : > { %1597 = shalt.err (!%p1594_p6)
}
 0x31f   : > { %s1598_s8 = scalar_lea.hbm %s1989_s4, 16  ;;  %s1602_s10 = scalar_lea.hbm %s2035_s3, 32 }
 0x320   : > { %p1599_p7 = scmp.ne.s32.totalorder %s1989_s4, %s1598_s8  ;;  %p1603_p13 = scmp.lt.s32.totalorder %s1989_s4, %s2035_s3 }
 0x321   : > { %p1604_p2 = scmp.lt.s32.totalorder %s1602_s10, %s1598_s8 }
 0x322   : > { %p1600_p10 = pnand %p1599_p7, %p1746_p9 }
 0x323   : > { %p1605_p8 = por %p1604_p2, %p1603_p13 }
 0x324   : > { %p1601_p4 = pneg %p1600_p10 }
 0x326   : > { %p1606_p12 = pnand %p1605_p8, %p1601_p4 }
 0x328   : > { %1609 = shalt.err (!%p1606_p12)
}
 0x329   : > { %1483 = dma.vmem_to_hbm [thread:$0]  (%p1746_p9), %s1339_s23, 16, %s1989_s4, %s1326_s24  }
 0x32a PF: > { %s1350_s19 = sand.u32 1, %s1644_s12   ;;  %p2041_p0 = scmp.ge.s32.totalorder %s1664_s17, 2 }
 0x32b   : > { %s1351_s21 = scalar_lea.sflag [#allocation6], %s1350_s19 }
 0x32c   : > { %p1490_p1 = pnand %p2041_p0, %p1753_p11 }
 0x32e   : > { %p1491_p3 = pneg %p1490_p1 }
 0x330   : > { %1639 = dma.done.wait (%p1491_p3), %s1351_s21, 16  }
 0x331   : > { %1641 = vsyncadd (%p1491_p3), %s1351_s21, 4294967280  ;;  %s19_s17 = sadd.s32 1, %s1664_s17   ;;  %s2042_s12 = smov %s1648_s13 }
 0x332   : > { %p16_p5 = scmp.ge.s32.totalorder %s19_s17, 4   ;;  %s2043_s13 = smov %s1652_s14 }
 0x333   : > { %s2044_s14 = smov %s1751_s26  ;;  %s2045_s15 = smov %s1660_s16 }
 0x334   : > { %s2046_s16 = smov %s2048_s20  ;;  %18 = sbr.rel (!%p16_p5) target bundleno = 6 (0x6), region = 85 }
 0x339   :  { %1355 = vsyncpa [#allocation5], 1 }
 0x33a   :  { %1357 = vsyncpa [#allocation5 + $0x1], 1 }
 0x33b   :  { %1358 = vsyncpa [#allocation6], 1 }
 0x33c   :  { %1360 = vsyncpa [#allocation6 + $0x1], 1 }

</bundles_post_ra>
